<compile_context>
chip_gen: v7x
topology: tpu7x:2x2x1
jax: 0.10.0
libtpu: 0.0.40
codegen_flags: <defaults>
</compile_context>

<pallas_src>
import functools

import jax
import jax.numpy as jnp
from jax.experimental import pallas as pl
from jax.experimental.pallas import tpu as pltpu


def _round_up(x, m):
    return ((x + m - 1) // m) * m


def _cdiv(a, b):
    return -(-a // b)


# ----------------------------------------------------------------------------
# Pallas kernels: tiled (patches @ W) with f32 accumulation and a fused
# bias (+ optional ReLU) epilogue on the last K step.
# ----------------------------------------------------------------------------
def _mm_bias_acc_kernel(x_ref, w_ref, b_ref, o_ref, acc_ref, *, relu: bool):
    """Narrow (non-f32) output dtype: accumulate in a f32 VMEM scratch."""
    k = pl.program_id(2)

    @pl.when(k == 0)
    def _():
        acc_ref[...] = jnp.zeros_like(acc_ref)

    acc_ref[...] += jnp.dot(x_ref[...], w_ref[...],
                            preferred_element_type=jnp.float32)

    @pl.when(k == pl.num_programs(2) - 1)
    def _():
        out = acc_ref[...] + b_ref[...]          # (1, tn) broadcasts over rows
        if relu:
            out = jnp.maximum(out, 0.0)
        o_ref[...] = out.astype(o_ref.dtype)


def _mm_bias_inplace_kernel(x_ref, w_ref, b_ref, o_ref, *, relu: bool):
    """f32 output dtype: accumulate directly into the resident output block
    (its index_map ignores k), saving the acc scratch and the epilogue copy."""
    k = pl.program_id(2)

    @pl.when(k == 0)
    def _():
        o_ref[...] = jnp.zeros_like(o_ref)

    o_ref[...] += jnp.dot(x_ref[...], w_ref[...],
                          preferred_element_type=jnp.float32)

    @pl.when(k == pl.num_programs(2) - 1)
    def _():
        out = o_ref[...] + b_ref[...]
        if relu:
            out = jnp.maximum(out, 0.0)
        o_ref[...] = out


# ----------------------------------------------------------------------------
# Tile selection: dtype-aware caps, even M split, no K padding when it fits,
# and >=2 parallel blocks where possible (v7x has 2 TensorCores).
# ----------------------------------------------------------------------------
def _pick_tiles(M, N, K, compute_dtype):
    itemsize = jnp.dtype(compute_dtype).itemsize
    row_g = 16 if itemsize <= 2 else 8           # bf16 packs 2 rows / sublane
    cap = 1024 if itemsize <= 2 else 512         # f32 tiles gated for v7x VMEM

    # M tiles: split evenly instead of round_up(M, cap).
    if M <= cap:
        tm = _round_up(M, row_g)
    else:
        tm = _round_up(_cdiv(M, _cdiv(M, cap)), row_g)
    Mp = _round_up(M, tm)

    # N tiles: lane granule 128 (lane-dense stores).
    if N <= cap:
        tn = _round_up(N, 128)
    else:
        tn = _round_up(_cdiv(N, _cdiv(N, cap)), 128)
    Np = _round_up(N, tn)

    # K tiles: when K fits in one tile use the full-dim exemption (no zero-pad,
    # no extra HBM pad copy); otherwise pad to a 128-multiple tile.
    if K <= cap:
        tk, Kp = K, K
    else:
        tk = _round_up(_cdiv(K, _cdiv(K, cap)), 128)
        Kp = _round_up(K, tk)

    # Guarantee >=2 parallel grid blocks when the problem allows it.
    if (Mp // tm) * (Np // tn) == 1:
        if tm >= 2 * row_g:
            tm = _round_up(_cdiv(Mp, 2), row_g)
            Mp = _round_up(M, tm)
        elif tn >= 2 * 128:
            tn = _round_up(_cdiv(Np, 2), 128)
            Np = _round_up(N, tn)

    return tm, tn, tk, Mp, Np, Kp


def _fused_patch_matmul(patches, w, b, *, relu: bool,
                        compute_dtype=jnp.bfloat16, out_dtype=jnp.float32):
    """patches: (M, K), w: (K, N), b: (N,) -> (M, N) in out_dtype."""
    M, K = patches.shape
    K2, N = w.shape
    assert K == K2
    compute_dtype = jnp.dtype(compute_dtype)
    out_dtype = jnp.dtype(out_dtype)

    tm, tn, tk, Mp, Np, Kp = _pick_tiles(M, N, K, compute_dtype)

    # Cast first (halves pad-copy bytes in bf16), then pad only what's needed.
    xp = patches.astype(compute_dtype)
    wp = w.astype(compute_dtype)
    if (Mp, Kp) != (M, K):
        xp = jnp.pad(xp, ((0, Mp - M), (0, Kp - K)))
    if (Kp, Np) != (K, N):
        wp = jnp.pad(wp, ((0, Kp - K), (0, Np - N)))
    bp = b.astype(jnp.float32)
    if Np != N:
        bp = jnp.pad(bp, (0, Np - N))
    bp = bp.reshape(1, Np)

    grid = (Mp // tm, Np // tn, Kp // tk)
    use_acc_scratch = out_dtype != jnp.float32
    kernel = functools.partial(
        _mm_bias_acc_kernel if use_acc_scratch else _mm_bias_inplace_kernel,
        relu=relu)
    scratch = ([pltpu.VMEM((tm, tn), jnp.float32)] if use_acc_scratch else [])

    # VMEM budget from the actual double-buffered working set (<= 64 MiB for
    # v7x; the tile caps keep this well under that).
    in_b, out_b = compute_dtype.itemsize, out_dtype.itemsize
    working = (2 * (tm * tk + tk * tn) * in_b + 2 * tm * tn * out_b
               + 2 * tn * 4 + (tm * tn * 4 if use_acc_scratch else 0))
    vmem_limit = int(min(max(32 * 1024 * 1024, working + 8 * 1024 * 1024),
                         64 * 1024 * 1024))

    cost = pl.CostEstimate(
        flops=2 * Mp * Np * Kp,
        transcendentals=0,
        bytes_accessed=(Mp * Kp + Kp * Np) * in_b + Np * 4 + Mp * Np * out_b)

    out = pl.pallas_call(
        kernel,
        out_shape=jax.ShapeDtypeStruct((Mp, Np), out_dtype),
        grid_spec=pltpu.PrefetchScalarGridSpec(
            num_scalar_prefetch=0,
            grid=grid,
            in_specs=[
                pl.BlockSpec((tm, tk), lambda i, j, k: (i, k)),
                pl.BlockSpec((tk, tn), lambda i, j, k: (k, j)),
                pl.BlockSpec((1, tn), lambda i, j, k: (0, j)),
            ],
            out_specs=pl.BlockSpec((tm, tn), lambda i, j, k: (i, j)),
            scratch_shapes=scratch,
        ),
        compiler_params=pltpu.CompilerParams(
            dimension_semantics=("parallel", "parallel", "arbitrary"),
            vmem_limit_bytes=vmem_limit,
        ),
        cost_estimate=cost,
    )(xp, wp, bp)

    if (Mp, Np) != (M, N):
        out = out[:M, :N]
    return out


# ----------------------------------------------------------------------------
# Glue: express Conv2d(kernel == stride) on NHWC tensors as patchify + matmul.
# ----------------------------------------------------------------------------
def _patchify_nhwc(x, ph, pw):
    """x: (B, H, W, C) -> (B*Gh*Gw, ph*pw*C), flattened in (kh, kw, Cin) order."""
    B, H, W, C = x.shape
    Gh, Gw = H // ph, W // pw
    # TODO(synk): fold this patch extraction into the kernel's BlockSpec
    # index_map (grid over (b, gh) slabs of the NHWC input) to avoid
    # materializing the patches matrix in HBM; kept wrapper-side here, but it
    # now runs in the (half-width) compute dtype.
    x = x.reshape(B, Gh, ph, Gw, pw, C)
    x = jnp.transpose(x, (0, 1, 3, 2, 4, 5))        # (B, Gh, Gw, ph, pw, C)
    return x.reshape(B * Gh * Gw, ph * pw * C), (B, Gh, Gw)


def _conv_as_matmul_nhwc(x, weight, bias, *, relu, compute_dtype, out_dtype):
    """x: (B, H, W, Cin) NHWC, weight: (Cout, Cin, kh, kw) (PyTorch OIHW,
    kernel == stride), bias: (Cout,).  Returns NHWC (B, Gh, Gw, Cout)."""
    Cout, Cin, kh, kw = weight.shape
    x = x.astype(compute_dtype)                     # cast BEFORE patchify copy
    patches, (B, Gh, Gw) = _patchify_nhwc(x, kh, kw)
    # Reorder OIHW -> (kh, kw, Cin, Cout) to match the patch flattening order.
    w2d = jnp.transpose(weight.astype(compute_dtype),
                        (2, 3, 1, 0)).reshape(kh * kw * Cin, Cout)
    out = _fused_patch_matmul(patches, w2d, bias, relu=relu,
                              compute_dtype=compute_dtype, out_dtype=out_dtype)
    return out.reshape(B, Gh, Gw, Cout)


# ----------------------------------------------------------------------------
# HybridEmbed forward (flatten=True, dynamic_img_pad=False, NCHW input)
# ----------------------------------------------------------------------------
def hybrid_embed_forward(x, params, *, compute_dtype=jnp.bfloat16):
    compute_dtype = jnp.dtype(compute_dtype)
    # Cast first so the single NCHW -> NHWC relayout copy is half-width (bf16).
    x = jnp.transpose(x.astype(compute_dtype), (0, 2, 3, 1))

    # 1) backbone: Conv2d(in_chans -> feature_dim, k=s=feature_ratio) + ReLU.
    #    Intermediate feature map is written in the compute dtype to halve the
    #    inter-stage HBM round-trip.
    feat = _conv_as_matmul_nhwc(
        x, params["backbone_w"], params["backbone_b"],
        relu=True, compute_dtype=compute_dtype,
        out_dtype=compute_dtype)                      # (B, Hf, Wf, Fdim)

    # 2) proj: Conv2d(feature_dim -> embed_dim, k=s=patch_size), no activation.
    #    Final output stays f32 (module semantics).
    # TODO(synk): fuse backbone->proj into one pallas_call (in-VMEM regroup of
    # ps x ps backbone pixels) to remove the intermediate HBM round-trip.
    y = _conv_as_matmul_nhwc(
        feat, params["proj_w"], params["proj_b"],
        relu=False, compute_dtype=compute_dtype,
        out_dtype=jnp.float32)                        # (B, Gh, Gw, E)

    # 3) flatten(2).transpose(1, 2): NHWC reshape already gives (B, N, E).
    B, Gh, Gw, E = y.shape
    return y.reshape(B, Gh * Gw, E)

# TODO(synk): dynamic_img_pad / alternate output_fmt branches are not exercised
# (pure padding / layout permutations outside the hot path).


# ----------------------------------------------------------------------------
# Reference (pure JAX, lax.conv) for a correctness sanity check
# ----------------------------------------------------------------------------
def _reference_forward(x, params):
    dn = ("NCHW", "OIHW", "NCHW")
    fr = params["feature_ratio"]
    ps = params["patch_size"]
    feat = jax.lax.conv_general_dilated(
        x, params["backbone_w"], (fr, fr), "VALID", dimension_numbers=dn)
    feat = jnp.maximum(feat + params["backbone_b"][None, :, None, None], 0.0)
    y = jax.lax.conv_general_dilated(
        feat, params["proj_w"], (ps, ps), "VALID", dimension_numbers=dn)
    y = y + params["proj_b"][None, :, None, None]
    B, E, Gh, Gw = y.shape
    return jnp.transpose(y.reshape(B, E, Gh * Gw), (0, 2, 1))


if __name__ == "__main__":
    # Small synthetic config consistent with the module:
    #   img_size=16, in_chans=4, backbone reduction (feature_ratio)=4
    #   -> feature_size=4x4, feature_dim=32
    #   patch_size=2 -> grid_size=2x2, num_patches=4, embed_dim=32
    B, in_chans, img = 2, 4, 16
    feature_ratio, feature_dim = 4, 32
    patch_size, embed_dim = 2, 32

    key = jax.random.PRNGKey(0)
    k_x, k_bw, k_bb, k_pw, k_pb = jax.random.split(key, 5)

    x = jax.random.normal(k_x, (B, in_chans, img, img), dtype=jnp.float32)

    params = {
        "feature_ratio": feature_ratio,
        "patch_size": patch_size,
        # backbone: Conv2d(in_chans, feature_dim, k=s=feature_ratio) + ReLU
        "backbone_w": 0.05 * jax.random.normal(
            k_bw, (feature_dim, in_chans, feature_ratio, feature_ratio),
            dtype=jnp.float32),
        "backbone_b": 0.01 * jax.random.normal(
            k_bb, (feature_dim,), dtype=jnp.float32),
        # proj: Conv2d(feature_dim, embed_dim, k=s=patch_size, bias=True)
        "proj_w": 0.05 * jax.random.normal(
            k_pw, (embed_dim, feature_dim, patch_size, patch_size),
            dtype=jnp.float32),
        "proj_b": 0.01 * jax.random.normal(
            k_pb, (embed_dim,), dtype=jnp.float32),
    }

    ref = _reference_forward(x, params)
    num_patches = (img // feature_ratio // patch_size) ** 2

    # f32 path: tight check against the lax.conv reference.
    fwd_f32 = jax.jit(functools.partial(hybrid_embed_forward,
                                        compute_dtype=jnp.float32))
    out = jax.block_until_ready(fwd_f32(x, params))
    assert out.shape == (B, num_patches, embed_dim)
    assert jnp.allclose(out, ref, atol=1e-5, rtol=1e-5), "f32 mismatch vs reference"

    # Default bf16 MXU-operand path (f32 accumulation): loose check.
    fwd_bf16 = jax.jit(hybrid_embed_forward)
    out_bf16 = jax.block_until_ready(fwd_bf16(x, params))
    assert out_bf16.shape == (B, num_patches, embed_dim)
    assert out_bf16.dtype == jnp.float32
    assert jnp.allclose(out_bf16, ref, atol=5e-2, rtol=5e-2), "bf16 mismatch vs reference"

    print("KERNEL_OK")
</pallas_src>

<mosaic_0001>
module attributes {stable_mosaic.version = 11 : i64} {
  func.func @_mm_bias_inplace_kernel(%arg0: i32, %arg1: i32, %arg2: i32, %arg3: memref<16x64xf32, #tpu.memory_space<vmem>>, %arg4: memref<64x128xf32, #tpu.memory_space<vmem>>, %arg5: memref<1x128xf32, #tpu.memory_space<vmem>>, %arg6: memref<16x128xf32, #tpu.memory_space<vmem>>) attributes {dimension_semantics = [#tpu.dimension_semantics<parallel>, #tpu.dimension_semantics<parallel>, #tpu.dimension_semantics<arbitrary>], iteration_bounds = array<i64: 2, 1, 1>, scalar_prefetch = 0 : i64, scratch_operands = 0 : i64, tpu.core_type = #tpu.core_type<tc>, window_params = [{transform_indices = @transform_0, window_bounds = array<i64: 16, 64>}, {transform_indices = @transform_1, window_bounds = array<i64: 64, 128>}, {transform_indices = @transform_2, window_bounds = array<i64: 1, 128>}, {transform_indices = @transform_3, window_bounds = array<i64: 16, 128>}]} {
    %c0_i32 = arith.constant 0 : i32
    %0 = arith.cmpi eq, %arg2, %c0_i32 : i32
    %1 = arith.extui %0 : i1 to i32
    %c0_i32_0 = arith.constant 0 : i32
    %2 = arith.cmpi ne, %1, %c0_i32_0 : i32
    scf.if %2 {
      %cst_10 = arith.constant 0.000000e+00 : f32
      %12 = vector.broadcast %cst_10 : f32 to vector<16x128xf32>
      %c0_11 = arith.constant 0 : index
      %c0_12 = arith.constant 0 : index
      %13 = vector.load %arg6[%c0_11, %c0_12] : memref<16x128xf32, #tpu.memory_space<vmem>>, vector<16x128xf32>
      tpu.vector_store %arg6[%c0_11, %c0_12], %12 {strides = array<i32>} : memref<16x128xf32, #tpu.memory_space<vmem>>, vector<16x128xf32>,
    } else {
    }
    %c0 = arith.constant 0 : index
    %c0_1 = arith.constant 0 : index
    %3 = vector.load %arg6[%c0, %c0_1] : memref<16x128xf32, #tpu.memory_space<vmem>>, vector<16x128xf32>
    %c0_2 = arith.constant 0 : index
    %c0_3 = arith.constant 0 : index
    %4 = vector.load %arg3[%c0_2, %c0_3] : memref<16x64xf32, #tpu.memory_space<vmem>>, vector<16x64xf32>
    %c0_4 = arith.constant 0 : index
    %c0_5 = arith.constant 0 : index
    %5 = vector.load %arg4[%c0_4, %c0_5] : memref<64x128xf32, #tpu.memory_space<vmem>>, vector<64x128xf32>
    %cst = arith.constant dense<0.000000e+00> : vector<16x128xf32>
    %6 = tpu.matmul %4, %5, %cst {dimension_numbers = #tpu.dot_dimension_numbers<[1], [0], [0], [1], [0, 0, 1, 1], [], []>} : vector<16x64xf32>, vector<64x128xf32>, vector<16x128xf32> -> vector<16x128xf32>
    %7 = arith.addf %3, %6 : vector<16x128xf32>
    %c0_6 = arith.constant 0 : index
    %c0_7 = arith.constant 0 : index
    %8 = vector.load %arg6[%c0_6, %c0_7] : memref<16x128xf32, #tpu.memory_space<vmem>>, vector<16x128xf32>
    tpu.vector_store %arg6[%c0_6, %c0_7], %7 {strides = array<i32>} : memref<16x128xf32, #tpu.memory_space<vmem>>, vector<16x128xf32>,
    %c0_i32_8 = arith.constant 0 : i32
    %9 = arith.cmpi eq, %arg2, %c0_i32_8 : i32
    %10 = arith.extui %9 : i1 to i32
    %c0_i32_9 = arith.constant 0 : i32
    %11 = arith.cmpi ne, %10, %c0_i32_9 : i32
    scf.if %11 {
      %c0_10 = arith.constant 0 : index
      %c0_11 = arith.constant 0 : index
      %12 = vector.load %arg6[%c0_10, %c0_11] : memref<16x128xf32, #tpu.memory_space<vmem>>, vector<16x128xf32>
      %c0_12 = arith.constant 0 : index
      %c0_13 = arith.constant 0 : index
      %13 = vector.load %arg5[%c0_12, %c0_13] : memref<1x128xf32, #tpu.memory_space<vmem>>, vector<1x128xf32>
      %14 = vector.broadcast %13 : vector<1x128xf32> to vector<16x128xf32>
      %15 = arith.addf %12, %14 : vector<16x128xf32>
      %cst_14 = arith.constant 0.000000e+00 : f32
      %16 = vector.broadcast %cst_14 : f32 to vector<16x128xf32>
      %17 = arith.maximumf %15, %16 : vector<16x128xf32>
      %c0_15 = arith.constant 0 : index
      %c0_16 = arith.constant 0 : index
      %18 = vector.load %arg6[%c0_15, %c0_16] : memref<16x128xf32, #tpu.memory_space<vmem>>, vector<16x128xf32>
      tpu.vector_store %arg6[%c0_15, %c0_16], %17 {strides = array<i32>} : memref<16x128xf32, #tpu.memory_space<vmem>>, vector<16x128xf32>,
    } else {
    }
    return
  }
  func.func @transform_0(%arg0: i32, %arg1: i32, %arg2: i32) -> (i32, i32) {
    %c0_i32 = arith.constant 0 : i32
    return %arg0, %arg2 : i32, i32
  }
  func.func @transform_1(%arg0: i32, %arg1: i32, %arg2: i32) -> (i32, i32) {
    %c0_i32 = arith.constant 0 : i32
    return %arg2, %arg1 : i32, i32
  }
  func.func @transform_2(%arg0: i32, %arg1: i32, %arg2: i32) -> (i32, i32) {
    %c0_i32 = arith.constant 0 : i32
    %c0_i32_0 = arith.constant 0 : i32
    return %c0_i32, %arg1 : i32, i32
  }
  func.func @transform_3(%arg0: i32, %arg1: i32, %arg2: i32) -> (i32, i32) {
    %c0_i32 = arith.constant 0 : i32
    return %arg0, %arg1 : i32, i32
  }
}

module attributes {stable_mosaic.version = 11 : i64} {
  func.func @_mm_bias_inplace_kernel(%arg0: i32, %arg1: i32, %arg2: i32, %arg3: memref<8x128xf32, #tpu.memory_space<vmem>>, %arg4: memref<128x128xf32, #tpu.memory_space<vmem>>, %arg5: memref<1x128xf32, #tpu.memory_space<vmem>>, %arg6: memref<8x128xf32, #tpu.memory_space<vmem>>) attributes {dimension_semantics = [#tpu.dimension_semantics<parallel>, #tpu.dimension_semantics<parallel>, #tpu.dimension_semantics<arbitrary>], iteration_bounds = array<i64: 1, 1, 1>, scalar_prefetch = 0 : i64, scratch_operands = 0 : i64, tpu.core_type = #tpu.core_type<tc>, window_params = [{transform_indices = @transform_0, window_bounds = array<i64: 8, 128>}, {transform_indices = @transform_1, window_bounds = array<i64: 128, 128>}, {transform_indices = @transform_2, window_bounds = array<i64: 1, 128>}, {transform_indices = @transform_3, window_bounds = array<i64: 8, 128>}]} {
    %c0_i32 = arith.constant 0 : i32
    %0 = arith.cmpi eq, %arg2, %c0_i32 : i32
    %1 = arith.extui %0 : i1 to i32
    %c0_i32_0 = arith.constant 0 : i32
    %2 = arith.cmpi ne, %1, %c0_i32_0 : i32
    scf.if %2 {
      %cst_10 = arith.constant 0.000000e+00 : f32
      %12 = vector.broadcast %cst_10 : f32 to vector<8x128xf32>
      %c0_11 = arith.constant 0 : index
      %c0_12 = arith.constant 0 : index
      %13 = vector.load %arg6[%c0_11, %c0_12] : memref<8x128xf32, #tpu.memory_space<vmem>>, vector<8x128xf32>
      tpu.vector_store %arg6[%c0_11, %c0_12], %12 {strides = array<i32>} : memref<8x128xf32, #tpu.memory_space<vmem>>, vector<8x128xf32>,
    } else {
    }
    %c0 = arith.constant 0 : index
    %c0_1 = arith.constant 0 : index
    %3 = vector.load %arg6[%c0, %c0_1] : memref<8x128xf32, #tpu.memory_space<vmem>>, vector<8x128xf32>
    %c0_2 = arith.constant 0 : index
    %c0_3 = arith.constant 0 : index
    %4 = vector.load %arg3[%c0_2, %c0_3] : memref<8x128xf32, #tpu.memory_space<vmem>>, vector<8x128xf32>
    %c0_4 = arith.constant 0 : index
    %c0_5 = arith.constant 0 : index
    %5 = vector.load %arg4[%c0_4, %c0_5] : memref<128x128xf32, #tpu.memory_space<vmem>>, vector<128x128xf32>
    %cst = arith.constant dense<0.000000e+00> : vector<8x128xf32>
    %6 = tpu.matmul %4, %5, %cst {dimension_numbers = #tpu.dot_dimension_numbers<[1], [0], [0], [1], [0, 0, 1, 1], [], []>} : vector<8x128xf32>, vector<128x128xf32>, vector<8x128xf32> -> vector<8x128xf32>
    %7 = arith.addf %3, %6 : vector<8x128xf32>
    %c0_6 = arith.constant 0 : index
    %c0_7 = arith.constant 0 : index
    %8 = vector.load %arg6[%c0_6, %c0_7] : memref<8x128xf32, #tpu.memory_space<vmem>>, vector<8x128xf32>
    tpu.vector_store %arg6[%c0_6, %c0_7], %7 {strides = array<i32>} : memref<8x128xf32, #tpu.memory_space<vmem>>, vector<8x128xf32>,
    %c0_i32_8 = arith.constant 0 : i32
    %9 = arith.cmpi eq, %arg2, %c0_i32_8 : i32
    %10 = arith.extui %9 : i1 to i32
    %c0_i32_9 = arith.constant 0 : i32
    %11 = arith.cmpi ne, %10, %c0_i32_9 : i32
    scf.if %11 {
      %c0_10 = arith.constant 0 : index
      %c0_11 = arith.constant 0 : index
      %12 = vector.load %arg6[%c0_10, %c0_11] : memref<8x128xf32, #tpu.memory_space<vmem>>, vector<8x128xf32>
      %c0_12 = arith.constant 0 : index
      %c0_13 = arith.constant 0 : index
      %13 = vector.load %arg5[%c0_12, %c0_13] : memref<1x128xf32, #tpu.memory_space<vmem>>, vector<1x128xf32>
      %14 = vector.broadcast %13 : vector<1x128xf32> to vector<8x128xf32>
      %15 = arith.addf %12, %14 : vector<8x128xf32>
      %c0_14 = arith.constant 0 : index
      %c0_15 = arith.constant 0 : index
      %16 = vector.load %arg6[%c0_14, %c0_15] : memref<8x128xf32, #tpu.memory_space<vmem>>, vector<8x128xf32>
      tpu.vector_store %arg6[%c0_14, %c0_15], %15 {strides = array<i32>} : memref<8x128xf32, #tpu.memory_space<vmem>>, vector<8x128xf32>,
    } else {
    }
    return
  }
  func.func @transform_0(%arg0: i32, %arg1: i32, %arg2: i32) -> (i32, i32) {
    %c0_i32 = arith.constant 0 : i32
    return %arg0, %arg2 : i32, i32
  }
  func.func @transform_1(%arg0: i32, %arg1: i32, %arg2: i32) -> (i32, i32) {
    %c0_i32 = arith.constant 0 : i32
    return %arg2, %arg1 : i32, i32
  }
  func.func @transform_2(%arg0: i32, %arg1: i32, %arg2: i32) -> (i32, i32) {
    %c0_i32 = arith.constant 0 : i32
    %c0_i32_0 = arith.constant 0 : i32
    return %c0_i32, %arg1 : i32, i32
  }
  func.func @transform_3(%arg0: i32, %arg1: i32, %arg2: i32) -> (i32, i32) {
    %c0_i32 = arith.constant 0 : i32
    return %arg0, %arg1 : i32, i32
  }
}

</mosaic_0001>

<bundles_post_ra>
// kernel: hybrid_embed_forward.2
= control target key start
LH: loop header
LB: loop body
LE: loop exit
PB: predicated region body
PF: predicated region fallthrough
CT: control target
= control target key end

     0   :  { %s623_s12 = smov 0   ;;  %s625_s13 = smov 0   ;;  %s685_s0 = inlined_call_operand.vmem [shape: f32[32,64], index: 0, kind: input, shape index: {}]   ;;  %s686_s1 = inlined_call_operand.vmem [shape: f32[64,128], index: 1, kind: input, shape index: {}]   ;;  %s687_s2 = inlined_call_operand.vmem [shape: f32[1,128], index: 2, kind: input, shape index: {}]   ;;  %s688_s3 = inlined_call_operand.vmem [shape: f32[32,128], index: 3, kind: output, shape index: {}]  }
   0x1   :  { %s627_s14 = smov 0  }
   0x2 LB: > { %s32_s15 = sadd.s32 1, %s596_s13  ;;  %p498_p0 = scmp.ge.s32.totalorder %s600_s14, 1  ;;  %s600_s14 = sphi %s627_s14, %s13_s14   ;;  %s596_s13 = sphi %s625_s13, %s690_s13   ;;  %s592_s12 = sphi %s623_s12, %s689_s12  }
   0x3   : > { %p34_p1 = scmp.ge.s32.totalorder %s32_s15, 2  ;;  %p188_p2 = scmp.lt.s32.totalorder %s600_s14, 3 }
   0x5   : > { %s692_s15 = smov (%p34_p1, %s32_s15), 0  ;;  %p189_p3 = pnand %p498_p0, %p188_p2 }
   0x6   : > { %v269_v0 = vld [vmem:[%s686_s1] sm:$0xff] (!%p189_p3)  ;;  %v270_v1 = vld [vmem:[%s686_s1 + $0x8] sm:$0xff] (!%p189_p3)  ;;  %v271_v2 = vld [vmem:[%s686_s1 + $0x10] sm:$0xff] (!%p189_p3)  ;;  %s499_s22 = sshll.u32 (!%p189_p3), %s592_s12, 1  ;;  %vm277_vm0 = vcmask (!%p189_p3), 523264   ;;  %v602_v11 = vmov (!%p189_p3), 0.0  }
   0x7   : > { %192 = sbr.rel (%p189_p3) target bundleno = 253 (0xfd), region = 32  ;;  %v537_v3 = vpack.c.bf16 (!%p189_p3), %v270_v1, %v269_v0  ;;  %v272_v4 = vld [vmem:[%s686_s1 + $0x18] sm:$0xff] (!%p189_p3)  ;;  %p230_p4 = scmp.lt.s32.totalorder (!%p189_p3), %s499_s22, 3  ;;  %v273_v6 = vld [vmem:[%s686_s1 + $0x20] sm:$0xff] (!%p189_p3)  ;;  %v274_v7 = vld [vmem:[%s686_s1 + $0x28] sm:$0xff] (!%p189_p3) }
   0x8   : > { %v541_v5 = vpack.c.bf16 (!%p189_p3), %v272_v4, %v271_v2  ;;  %v545_v8 = vpack.c.bf16 (!%p189_p3), %v274_v7, %v273_v6  ;;  %v275_v9 = vld [vmem:[%s686_s1 + $0x30] sm:$0xff] (!%p189_p3)  ;;  %v276_v10 = vld [vmem:[%s686_s1 + $0x38] sm:$0xff] (!%p189_p3)  ;;  %v505_v19 = vld [vmem:[%s687_s2] ss:$0 sm:$0xff] (!%p189_p3) }
   0x9   : > { %538 = vmatprep.subr.bf16.mxu0 (!%p189_p3), %v537_v3  ;;  %v549_v13 = vpack.c.bf16 (!%p189_p3), %v276_v10, %v275_v9 }
   0xa   : > { %540 = vmatpush3.bf16.msra.mxu0 (!%p189_p3), %v537_v3 }
   0xb   : > { %542 = vmatprep.subr.bf16.mxu0 (!%p189_p3), %v541_v5 }
   0xe   : > { %s694_s22 = smov (!%p230_p4, %s499_s22), 3  ;;  %544 = vmatpush3.bf16.msra.mxu0 %v541_v5 }
   0xf   : > { %s500_s29 = sshll.u32 %s694_s22, 3  ;;  %546 = vmatprep.subr.bf16.mxu0 %v545_v8 }
  0x10   : > { %s236_s9 = scalar_lea.vmem %s685_s0, %s500_s29  ;;  %s257_s12 = scalar_lea.vmem %s688_s3, %s500_s29 }
  0x11   : > { %263 = vst [vmem:[%s257_s12] sm:$0xff] %v602_v11  ;;  %v267_v12 = vld [vmem:[%s236_s9] sm:$0xff]  ;;  %264 = vst [vmem:[%s257_s12 + $0x8] sm:$0xff] %v602_v11  ;;  %v268_v14 = vld [vmem:[%s236_s9 + $0x8] sm:$0xff] }
  0x12   : > { %534 = vmatprep.mubr.msk.f32.mxu0 %vm277_vm0, %v267_v12  ;;  %548 = vmatpush3.bf16.msra.mxu0 %v545_v8 }
  0x13   : > { %550 = vmatprep.subr.bf16.mxu0 %v549_v13 }
  0x16   : > { %552 = vmatpush3.bf16.msra.mxu0 %v549_v13 }
  0x18   : > { %v265_v15 = vld [vmem:[%s257_s12] sm:$0xff] }
  0x19   : > { %535 = vmatmul.mubr.msk.f32.vlgmr.msra.gmra.mrb[0].mxu0 %vm277_vm0, %v268_v14 }
  0xec   : > { %v536_v16 = vpop.f32.mrb[0].mxu0 }
  0xed   : > { %v350_v17 = vpop.f32.mrb[1].mxu0  ;;  %362 = vst [vmem:[%s257_s12 + $0x8] sm:$0xff] %v536_v16  ;;  %v376_v21 = vadd.f32 %v536_v16, %v505_v19 }
  0xee   : > { %v359_v18 = vadd.f32 %v350_v17, %v265_v15 }
  0xef   : > { %v378_v24 = vmax.f32 %v376_v21, 0.0 }
  0xf0   : > { %361 = vst [vmem:[%s257_s12] sm:$0xff] %v359_v18 }
  0xf1   : > { %380 = vst [vmem:[%s257_s12 + $0x8] sm:$0xff] %v378_v24 }
  0xf7   : > { %v366_v20 = vld [vmem:[%s257_s12] sm:$0xff] }
  0xf8   : > { %v375_v22 = vadd.f32 %v505_v19, %v366_v20 }
  0xfa   : > { %v377_v23 = vmax.f32 %v375_v22, 0.0 }
  0xfc   : > { %379 = vst [vmem:[%s257_s12] sm:$0xff] %v377_v23 }
  0xfd PF: > { %s13_s14 = sadd.s32 1, %s600_s14   ;;  %s689_s12 = smov %s596_s13 }
  0xfe   : > { %p10_p5 = scmp.ge.s32.totalorder %s13_s14, 4   ;;  %s690_s13 = smov %s692_s15 }
 0x100   :  { %12 = sbr.rel (!%p10_p5) target bundleno = 2 (0x2), region = 76 }

// kernel: hybrid_embed_forward.3
= control target key start
LH: loop header
LB: loop body
LE: loop exit
PB: predicated region body
PF: predicated region fallthrough
CT: control target
= control target key end

     0   :  { %v242_v3 = vmov 0.0|0.0   ;;  %vm243_vm0 = vmmov 0   ;;  %v244_v6 = vmov 0.0   ;;  %s332_s0 = inlined_call_operand.vmem [shape: f32[8,128], index: 0, kind: input, shape index: {}]   ;;  %s333_s1 = inlined_call_operand.vmem [shape: f32[128,128], index: 1, kind: input, shape index: {}]   ;;  %s334_s2 = inlined_call_operand.vmem [shape: f32[1,128], index: 2, kind: input, shape index: {}]   ;;  %s335_s3 = inlined_call_operand.hbm [shape: f32[8,128], index: 3, kind: output, shape index: {}]  }
   0x1   :  { %v22_v0 = vld [vmem:[%s333_s1] sm:$0xff]  ;;  %v23_v1 = vld [vmem:[%s333_s1 + $0x8] sm:$0xff]  ;;  %v24_v2 = vld [vmem:[%s333_s1 + $0x10] sm:$0xff]  ;;  %190 = vmatprep.subr.bf16.mxu0 %v242_v3  ;;  %187 = vmatprep.mubr.msk.f32.mxu0 %vm243_vm0, %v244_v6 }
   0x2   :  { %v191_v4 = vpack.c.bf16 %v23_v1, %v22_v0  ;;  %v25_v5 = vld [vmem:[%s333_s1 + $0x18] sm:$0xff]  ;;  %v26_v8 = vld [vmem:[%s333_s1 + $0x20] sm:$0xff]  ;;  %v27_v9 = vld [vmem:[%s333_s1 + $0x28] sm:$0xff] }
   0x3   :  { %v194_v7 = vpack.c.bf16 %v25_v5, %v24_v2 }
   0x4   :  { %192 = vmatpush3.bf16.msra.mxu0 %v191_v4 }
   0x5   :  { %193 = vmatprep.subr.bf16.mxu0 %v242_v3 }
   0x6   :  { %8 = vsyncpa [#allocation3], 0  ;;  %v197_v10 = vpack.c.bf16 %v27_v9, %v26_v8  ;;  %v28_v11 = vld [vmem:[%s333_s1 + $0x30] sm:$0xff]  ;;  %v29_v12 = vld [vmem:[%s333_s1 + $0x38] sm:$0xff]  ;;  %s245_s21 = smov [#allocation2]  }
   0x7   :  { %v200_v13 = vpack.c.bf16 %v29_v12, %v28_v11  ;;  %v30_v14 = vld [vmem:[%s333_s1 + $0x40] sm:$0xff]  ;;  %v31_v15 = vld [vmem:[%s333_s1 + $0x48] sm:$0xff]  ;;  %v32_v17 = vld [vmem:[%s333_s1 + $0x50] sm:$0xff]  ;;  %s129_s22 = sshll.u32 %s245_s21, 4  ;;  %s130_s22 = int_to_ptr.vmem [resolvable:$true] %s129_s22 }
   0x8   :  { %195 = vmatpush3.bf16.msra.mxu0 %v194_v7  ;;  %v203_v16 = vpack.c.bf16 %v31_v15, %v30_v14  ;;  %v33_v18 = vld [vmem:[%s333_s1 + $0x58] sm:$0xff]  ;;  %v34_v20 = vld [vmem:[%s333_s1 + $0x60] sm:$0xff]  ;;  %v35_v21 = vld [vmem:[%s333_s1 + $0x68] sm:$0xff]  ;;  %p223_p1 = scmp.lt.s32.totalorder %s130_s22, %s130_s22 }
   0x9   :  { %196 = vmatprep.subr.bf16.mxu0 %v242_v3  ;;  %v206_v19 = vpack.c.bf16 %v33_v18, %v32_v17  ;;  %v209_v22 = vpack.c.bf16 %v35_v21, %v34_v20  ;;  %v36_v23 = vld [vmem:[%s333_s1 + $0x70] sm:$0xff]  ;;  %v37_v24 = vld [vmem:[%s333_s1 + $0x78] sm:$0xff]  ;;  %v21_v26 = vld [vmem:[%s332_s0] sm:$0xff]  ;;  %s218_s1 = scalar_lea.vmem %s130_s22, 128 }
   0xa   :  { %v212_v25 = vpack.c.bf16 %v37_v24, %v36_v23  ;;  %v137_v28 = vld [vmem:[%s334_s2] ss:$0 sm:$0xff]  ;;  %p219_p0 = scmp.ne.s32.totalorder %s130_s22, %s218_s1  ;;  %p224_p2 = scmp.lt.s32.totalorder %s218_s1, %s218_s1 }
   0xc   :  { %198 = vmatpush3.bf16.msra.mxu0 %v197_v10  ;;  %p225_p3 = por %p224_p2, %p223_p1 }
   0xd   :  { %199 = vmatprep.subr.bf16.mxu0 %v242_v3 }
   0xe   :  { %p226_p4 = pnand %p225_p3, %p219_p0 }
  0x10   :  { %201 = vmatpush3.bf16.msra.mxu0 %v200_v13 }
  0x11   :  { %202 = vmatprep.subr.bf16.mxu0 %v242_v3 }
  0x14   :  { %204 = vmatpush3.bf16.msra.mxu0 %v203_v16 }
  0x15   :  { %205 = vmatprep.subr.bf16.mxu0 %v242_v3 }
  0x18   :  { %207 = vmatpush3.bf16.msra.mxu0 %v206_v19 }
  0x19   :  { %208 = vmatprep.subr.bf16.mxu0 %v242_v3 }
  0x1c   :  { %210 = vmatpush3.bf16.msra.mxu0 %v209_v22 }
  0x1d   :  { %211 = vmatprep.subr.bf16.mxu0 %v242_v3 }
  0x20   :  { %213 = vmatpush3.bf16.msra.mxu0 %v212_v25 }
  0x23   :  { %188 = vmatmul.mubr.f32.vlgmr.msra.gmra.mrb[0].mxu0 %v21_v26 }
  0xf6   :  { %v104_v27 = vpop.f32.mrb[0].mxu0 }
  0xf7   :  { %v189_v29 = vpop.f32.mrb[1].mxu0  ;;  %v121_v30 = vadd.f32 %v137_v28, %v104_v27 }
  0xf9   :  { %122 = vst [vmem:[#allocation2] sm:$0xff] %v121_v30 }
  0xfa   :  { %229 = shalt.err (!%p226_p4)
}
  0xfb   :  { %s230_s24 = scalar_lea.hbm %s335_s3, 128 }
  0xfc   :  { %p231_p5 = scmp.ne.s32.totalorder %s335_s3, %s230_s24  ;;  %p234_p6 = scmp.lt.u32.totalorder %s230_s24, %s335_s3 }
  0xfe   :  { %p236_p7 = pnand %p234_p6, %p231_p5 }
 0x100   :  { %239 = shalt.err (!%p236_p7)
}
 0x101   :  { %132 = dma.vmem_to_hbm [thread:$0]  %s130_s22, 128, %s335_s3, [#allocation3]  }
 0x102   :  { %240 = dma.done.wait [#allocation3], 128  }
 0x103   :  { %241 = vsyncadd [#allocation3], 4294967168 }
 0x104   :  { %136 = vsyncpa [#allocation3], 1 }

</bundles_post_ra>
